<compile_context>
chip_gen: v7x
topology: tpu7x:2x2x1
jax: 0.10.0
libtpu: 0.0.40
codegen_flags: <defaults>
</compile_context>

<pallas_src>
import jax
import jax.numpy as jnp
from jax import lax
from jax.experimental import pallas as pl
from jax.experimental.pallas import tpu as pltpu

# Module geometry (input 1x3x100x100):
#   conv1: k=3, s=3 -> 33x33 ; conv2: k=3, s=7 -> 5x5
K1, S1 = 3, 3
K2, S2 = 3, 7
CIN, C1, C2 = 3, 15, 16


def _fused_conv_kernel(wc_ref, a_ref, o_ref):
    """Single folded matmul: conv2(conv1(x)) + biases + 0.1.

    wc_ref: (16, 244)  folded conv1*conv2 weight, last column = folded bias
    a_ref : (244, 25)  composite im2col patches, last row = ones (bias lane)
    o_ref : (16, 25)   output, pixels (oh2*5 + ow2) on the lane axis
    """
    o_ref[...] = jnp.dot(wc_ref[...], a_ref[...],
                         preferred_element_type=jnp.float32)


@jax.jit
def model_forward(x_nchw, w1, b1, w2, b2):
    # x_nchw: (1, 3, 100, 100); w1: (15,3,3,3) OIHW; w2: (16,15,3,3) OIHW
    _, cin, H, W = x_nchw.shape
    assert K1 == S1, "patch extraction relies on conv1 stride == kernel"
    oh1 = (H - K1) // S1 + 1          # 33
    ow1 = (W - K1) // S1 + 1          # 33
    oh2 = (oh1 - K2) // S2 + 1        # 5
    ow2 = (ow1 - K2) // S2 + 1        # 5
    span = S1 * (K2 - 1) + K1         # 9  rows/cols of x per conv2 output pixel
    period = S1 * S2                  # 21 spacing between output-pixel groups
    npix = oh2 * ow2                  # 25
    k1 = cin * K1 * K1                # 27
    kc = K2 * K2 * k1                 # 243 composite contraction dim

    # ---- layout plumbing (tiny; fused under this jit) --------------------
    xs = x_nchw[0]                                             # (3, 100, 100)
    xp = jnp.pad(xs, ((0, 0), (0, period * oh2 - H), (0, period * ow2 - W)))
    xb = xp.reshape(cin, oh2, period, ow2, period)[:, :, :span, :, :span]
    # split intra-span offsets (3*kh2 + kh1) into conv2-tap / conv1-tap axes
    xb = xb.reshape(cin, oh2, K2, K1, ow2, K2, K1)
    # -> (kh2, kw2, cin, kh1, kw1, oh2, ow2) -> (243, 25)
    a1 = jnp.transpose(xb, (2, 5, 0, 3, 6, 1, 4)).reshape(kc, npix)
    # append a row of ones so the folded bias rides the matmul -> (244, 25)
    a = jnp.concatenate([a1, jnp.ones((1, npix), a1.dtype)], axis=0)

    # ---- fold conv1 into conv2 (host-side, under jit) ---------------------
    w1_flat = w1.reshape(C1, k1)                                       # (15, 27)
    w2_tap = jnp.transpose(w2, (2, 3, 0, 1)).reshape(K2 * K2, C2, C1)  # (9, 16, 15)
    wc = jnp.einsum('toc,ck->otk', w2_tap, w1_flat).reshape(C2, kc)    # (16, 243)
    bc = b2 + jnp.sum(w2_tap, axis=0) @ b1 + jnp.float32(0.1)          # (16,)
    wcb = jnp.concatenate([wc, bc[:, None]], axis=1)                   # (16, 244)

    out = pl.pallas_call(
        _fused_conv_kernel,
        out_shape=jax.ShapeDtypeStruct((C2, npix), jnp.float32),
        in_specs=[
            pl.BlockSpec((C2, kc + 1), lambda: (0, 0)),
            pl.BlockSpec((kc + 1, npix), lambda: (0, 0)),
        ],
        out_specs=pl.BlockSpec((C2, npix), lambda: (0, 0)),
        compiler_params=pltpu.CompilerParams(
            allow_input_fusion=[True, True]),
    )(wcb, a)

    return out.reshape(C2, oh2, ow2)[None]                     # (1, 16, 5, 5)


def reference_forward(x_nchw, w1, b1, w2, b2):
    dn = ("NCHW", "OIHW", "NCHW")
    v1 = lax.conv_general_dilated(x_nchw, w1, (S1, S1), "VALID",
                                  dimension_numbers=dn) + b1[None, :, None, None]
    v2 = lax.conv_general_dilated(v1, w2, (S2, S2), "VALID",
                                  dimension_numbers=dn) + b2[None, :, None, None]
    return v2 + 0.1


if __name__ == "__main__":
    key = jax.random.PRNGKey(0)
    k_x, k_w1, k_b1, k_w2, k_b2 = jax.random.split(key, 5)

    # input matching the PyTorch script: x1 = torch.randn(1, 3, 100, 100)
    x1 = jax.random.normal(k_x, (1, 3, 100, 100), dtype=jnp.float32)

    # parameters in PyTorch OIHW layout: Conv2d(3,15,3,stride=3), Conv2d(15,16,3,stride=7)
    w1 = jax.random.normal(k_w1, (15, 3, 3, 3), dtype=jnp.float32) * 0.1
    b1 = jax.random.normal(k_b1, (15,), dtype=jnp.float32) * 0.1
    w2 = jax.random.normal(k_w2, (16, 15, 3, 3), dtype=jnp.float32) * 0.1
    b2 = jax.random.normal(k_b2, (16,), dtype=jnp.float32) * 0.1

    out = jax.block_until_ready(model_forward(x1, w1, b1, w2, b2))
    ref = jax.block_until_ready(reference_forward(x1, w1, b1, w2, b2))

    assert out.shape == (1, 16, 5, 5), out.shape
    max_err = float(jnp.max(jnp.abs(out - ref)))
    assert jnp.allclose(out, ref, atol=1e-4, rtol=1e-4), max_err
    print("KERNEL_OK")
</pallas_src>

<mosaic_0001>
module attributes {stable_mosaic.version = 11 : i64} {
  func.func @_fused_conv_kernel(%arg0: memref<16x244xf32, #tpu.memory_space<vmem>>, %arg1: memref<244x25xf32, #tpu.memory_space<vmem>>, %arg2: memref<16x25xf32, #tpu.memory_space<vmem>>) attributes {dimension_semantics = [], scalar_prefetch = 0 : i64, scratch_operands = 0 : i64, tpu.core_type = #tpu.core_type<tc>} {
    %c0 = arith.constant 0 : index
    %c0_0 = arith.constant 0 : index
    %0 = vector.load %arg0[%c0, %c0_0] : memref<16x244xf32, #tpu.memory_space<vmem>>, vector<16x244xf32>
    %c0_1 = arith.constant 0 : index
    %c0_2 = arith.constant 0 : index
    %1 = vector.load %arg1[%c0_1, %c0_2] : memref<244x25xf32, #tpu.memory_space<vmem>>, vector<244x25xf32>
    %cst = arith.constant dense<0.000000e+00> : vector<16x25xf32>
    %2 = tpu.matmul %0, %1, %cst {dimension_numbers = #tpu.dot_dimension_numbers<[1], [0], [0], [1], [0, 0, 1, 1], [], []>} : vector<16x244xf32>, vector<244x25xf32>, vector<16x25xf32> -> vector<16x25xf32>
    %c0_3 = arith.constant 0 : index
    %c0_4 = arith.constant 0 : index
    %3 = vector.load %arg2[%c0_3, %c0_4] : memref<16x25xf32, #tpu.memory_space<vmem>>, vector<16x25xf32>
    tpu.vector_store %arg2[%c0_3, %c0_4], %2 {strides = array<i32>} : memref<16x25xf32, #tpu.memory_space<vmem>>, vector<16x25xf32>,
    return
  }
}

</mosaic_0001>

<bundles_post_ra>
// kernel: model_forward.2
= control target key start
LH: loop header
LB: loop body
LE: loop exit
PB: predicated region body
PF: predicated region fallthrough
CT: control target
= control target key end

     0   :  { %s1149_s0 = inlined_call_operand.vmem [shape: f32[243,25], index: 0, kind: input, shape index: {}]   ;;  %s1150_s1 = inlined_call_operand.<no memory space> [shape: f32[], index: 1, kind: input, shape index: {}]   ;;  %s1151_s2 = inlined_call_operand.vmem [shape: f32[16,1], index: 2, kind: input, shape index: {}]   ;;  %s1152_s3 = inlined_call_operand.<no memory space> [shape: f32[], index: 3, kind: input, shape index: {}]   ;;  %s1153_s4 = inlined_call_operand.vmem [shape: f32[16,243], index: 4, kind: input, shape index: {}]   ;;  %s1154_s5 = inlined_call_operand.vmem [shape: f32[16,25], index: 5, kind: output, shape index: {}]  }
   0x1   :  { %v883_v0 = vstv %s1152_s3  ;;  %v888_v1 = vstv %s1150_s1 }
   0x2   :  { %v62_v2 = vlaneseq  ;;  %v847_v3 = vmov 0.0|0.0   ;;  %v133_v4 = vld [vmem:[%s1149_s0] sm:$0xff]  ;;  %v734_v7 = vld [vmem:[%s1149_s0 + $0x8] sm:$0xff]  ;;  %v735_v8 = vld [vmem:[%s1149_s0 + $0x10] sm:$0xff]  ;;  %s848_s25 = smov 115   ;;  %vm638_vm4 = vcmask 1043456  }
   0x3   :  { %767 = vmatprep.subr.bf16.mxu0 %v847_v3  ;;  %812 = vmatprep.subr.bf16.mxu1 %v847_v3  ;;  %v736_v9 = vld [vmem:[%s1149_s0 + $0x18] sm:$0xff]  ;;  %v49_v10 = vld [vmem:[%s1151_s2] sm:$0xff]  ;;  %v763_v11 = vld [vmem:[%s1149_s0 + $0xf0] sm:$0xff]  ;;  %vm631_vm6 = vcmask 949248   ;;  %vm717_vm7 = vcmask 203776  }
   0x4   :  { %v895_v5 = vand.u32 127, %v62_v2  ;;  %v584_v6 = vshrl.u32 %v62_v2, 7  ;;  %v731_v14 = vld [vmem:[%s1151_s2 + $0x8] sm:$0xff]  ;;  %v737_v15 = vld [vmem:[%s1149_s0 + $0x20] sm:$0xff]  ;;  %v739_v22 = vld [vmem:[%s1149_s0 + $0x30] sm:$0xff] }
   0x5   :  { %v738_v21 = vld [vmem:[%s1149_s0 + $0x28] sm:$0xff]  ;;  %v740_v23 = vld [vmem:[%s1149_s0 + $0x38] sm:$0xff]  ;;  %v741_v28 = vld [vmem:[%s1149_s0 + $0x40] sm:$0xff] }
   0x6   :  { %v64_v12 = vadd.s32 256, %v895_v5  ;;  %vm69_vm0 = vcmp.lt.s32.totalorder %v895_v5, 13  ;;  %vm142_vm1 = vcmp.lt.s32.totalorder %v895_v5, 25  ;;  %v585_v13 = vadd.s32 240, %v584_v6  ;;  %v742_v29 = vld [vmem:[%s1149_s0 + $0x48] sm:$0xff]  ;;  %v743_v33 = vld [vmem:[%s1149_s0 + $0x50] sm:$0xff] }
   0x7   :  { %v143_v16 = vsel %vm142_vm1, %v133_v4, %v888_v1  ;;  %v157_v17 = vsel %vm142_vm1, %v734_v7, %v888_v1  ;;  %v172_v18 = vsel %vm142_vm1, %v735_v8, %v888_v1  ;;  %v187_v19 = vsel %vm142_vm1, %v736_v9, %v888_v1  ;;  %v744_v34 = vld [vmem:[%s1149_s0 + $0x58] sm:$0xff]  ;;  %v745_v35 = vld [vmem:[%s1149_s0 + $0x60] sm:$0xff]  ;;  %v746_v39 = vld [vmem:[%s1149_s0 + $0x68] sm:$0xff] }
   0x8   :  { %vm65_vm2 = vcmp.lt.s32.totalorder %v64_v12, 257  ;;  %vm586_vm3 = vcmp.lt.s32.totalorder %v585_v13, 243  ;;  %v768_v20 = vpack.c.bf16 %v157_v17, %v143_v16  ;;  %v202_v27 = vsel %vm142_vm1, %v737_v15, %v888_v1  ;;  %v747_v40 = vld [vmem:[%s1149_s0 + $0x70] sm:$0xff]  ;;  %v748_v44 = vld [vmem:[%s1149_s0 + $0x78] sm:$0xff]  ;;  %v749_v45 = vld [vmem:[%s1149_s0 + $0x80] sm:$0xff] }
   0x9   :  { %v66_v24 = vsel %vm65_vm2, %v49_v10, %v883_v0  ;;  %v587_v25 = vsel %vm586_vm3, %v763_v11, %v888_v1  ;;  %v112_v26 = vsel %vm65_vm2, %v731_v14, %v883_v0  ;;  %v771_v32 = vpack.c.bf16 %v187_v19, %v172_v18  ;;  %v750_v49 = vld [vmem:[%s1149_s0 + $0x88] sm:$0xff]  ;;  %v751_v50 = vld [vmem:[%s1149_s0 + $0x90] sm:$0xff]  ;;  %v752_v51 = vld [vmem:[%s1149_s0 + $0x98] sm:$0xff] }
   0xa   :  { %v70_v30 = vsel %vm69_vm0, %v66_v24, %v883_v0  ;;  %v592_v31 = vsel %vm142_vm1, %v587_v25, %v888_v1  ;;  %769 = vmatpush1.bf16.msra.mxu0 %v768_v20  ;;  %828 = vmatpush1.bf16.msra.mxu1 %v768_v20  ;;  %v217_v36 = vsel %vm142_vm1, %v738_v21, %v888_v1  ;;  %v753_v55 = vld [vmem:[%s1149_s0 + $0xa0] sm:$0xff]  ;;  %v754_v56 = vld [vmem:[%s1149_s0 + $0xa8] sm:$0xff]  ;;  %v755_v59 = vld [vmem:[%s1149_s0 + $0xb0] sm:$0xff] }
   0xb   :  { %595 = vst [vmem:[#allocation18 + $0xf0] sm:$0xff] %v592_v31  ;;  %71 = vrot.lane.b32.xlu0 %v70_v30, %s848_s25  ;;  %770 = vmatprep.subr.bf16.mxu0 %v847_v3  ;;  %v232_v37 = vsel %vm142_vm1, %v739_v22, %v888_v1  ;;  %v247_v38 = vsel %vm142_vm1, %v740_v23, %v888_v1  ;;  %v756_v60 = vld [vmem:[%s1149_s0 + $0xb8] sm:$0xff]  ;;  %v757_v2 = vld [vmem:[%s1149_s0 + $0xc0] sm:$0xff]  ;;  %v758_v4 = vld [vmem:[%s1149_s0 + $0xc8] sm:$0xff]  ;;  %v849_v31 = vmov 0.0  }
   0xc   :  { %v116_v41 = vsel %vm69_vm0, %v112_v26, %v883_v0  ;;  %813 = vmatprep.subr.bf16.mxu1 %v847_v3  ;;  %v262_v42 = vsel %vm142_vm1, %v741_v28, %v888_v1  ;;  %v277_v43 = vsel %vm142_vm1, %v742_v29, %v888_v1  ;;  %v292_v46 = vsel %vm142_vm1, %v743_v33, %v888_v1  ;;  %v759_v8 = vld [vmem:[%s1149_s0 + $0xd0] sm:$0xff]  ;;  %v760_v9 = vld [vmem:[%s1149_s0 + $0xd8] sm:$0xff]  ;;  %v761_v13 = vld [vmem:[%s1149_s0 + $0xe0] sm:$0xff] }
   0xd   :  { %v307_v47 = vsel %vm142_vm1, %v744_v34, %v888_v1  ;;  %v322_v48 = vsel %vm142_vm1, %v745_v35, %v888_v1  ;;  %v774_v52 = vpack.c.bf16 %v217_v36, %v202_v27  ;;  %v337_v53 = vsel %vm142_vm1, %v746_v39, %v888_v1  ;;  %v762_v14 = vld [vmem:[%s1149_s0 + $0xe8] sm:$0xff]  ;;  %v733_v36 = vld [vmem:[%s1153_s4 + $0x18] sm:$0xff]  ;;  %v732_v39 = vld [vmem:[%s1153_s4 + $0x10] sm:$0xff] }
   0xe   :  { %772 = vmatpush1.bf16.msra.mxu0 %v771_v32  ;;  %829 = vmatpush1.bf16.msra.mxu1 %v771_v32  ;;  %v352_v54 = vsel %vm142_vm1, %v747_v40, %v888_v1  ;;  %v367_v57 = vsel %vm142_vm1, %v748_v44, %v888_v1  ;;  %v382_v58 = vsel %vm142_vm1, %v749_v45, %v888_v1  ;;  %v77_v33 = vadd.s32 128, %v895_v5  ;;  %v730_v34 = vld [vmem:[%s1153_s4 + $0x8] sm:$0xff] }
   0xf   :  { %117 = vrot.lane.b32.xlu0 %v116_v41, %s848_s25  ;;  %773 = vmatprep.subr.bf16.mxu0 %v847_v3  ;;  %v397_v61 = vsel %vm142_vm1, %v750_v49, %v888_v1  ;;  %v412_v62 = vsel %vm142_vm1, %v751_v50, %v888_v1  ;;  %v427_v63 = vsel %vm142_vm1, %v752_v51, %v888_v1 }
  0x10   :  { %814 = vmatprep.subr.bf16.mxu1 %v847_v3  ;;  %v442_v6 = vsel %vm142_vm1, %v753_v55, %v888_v1  ;;  %v457_v7 = vsel %vm142_vm1, %v754_v56, %v888_v1  ;;  %v777_v10 = vpack.c.bf16 %v247_v38, %v232_v37  ;;  %v472_v11 = vsel %vm142_vm1, %v755_v59, %v888_v1 }
  0x11   :  { %v487_v12 = vsel %vm142_vm1, %v756_v60, %v888_v1  ;;  %v502_v15 = vsel %vm142_vm1, %v757_v2, %v888_v1  ;;  %v517_v16 = vsel %vm142_vm1, %v758_v4, %v888_v1  ;;  %v532_v17 = vsel %vm142_vm1, %v759_v8, %v888_v1 }
  0x12   :  { %775 = vmatpush1.bf16.msra.mxu0 %v774_v52  ;;  %830 = vmatpush1.bf16.msra.mxu1 %v774_v52  ;;  %v547_v18 = vsel %vm142_vm1, %v760_v9, %v888_v1  ;;  %v562_v19 = vsel %vm142_vm1, %v761_v13, %v888_v1  ;;  %v577_v20 = vsel %vm142_vm1, %v762_v14, %v888_v1  ;;  %v630_v32 = vld [vmem:[#allocation18 + $0xf0] sm:$0xf]  ;;  %vm78_vm5 = vcmp.lt.s32.totalorder %v77_v33, 243 }
  0x13   :  { %776 = vmatprep.subr.bf16.mxu0 %v847_v3  ;;  %815 = vmatprep.subr.bf16.mxu1 %v847_v3  ;;  %v780_v21 = vpack.c.bf16 %v277_v43, %v262_v42  ;;  %v783_v22 = vpack.c.bf16 %v307_v47, %v292_v46  ;;  %v786_v23 = vpack.c.bf16 %v337_v53, %v322_v48 }
  0x14   :  { %v789_v1 = vpack.c.bf16 %v367_v57, %v352_v54  ;;  %v792_v24 = vpack.c.bf16 %v397_v61, %v382_v58  ;;  %v795_v25 = vpack.c.bf16 %v427_v63, %v412_v62  ;;  %v798_v26 = vpack.c.bf16 %v457_v7, %v442_v6 }
  0x15   :  { %v801_v27 = vpack.c.bf16 %v487_v12, %v472_v11  ;;  %v804_v28 = vpack.c.bf16 %v517_v16, %v502_v15  ;;  %v807_v29 = vpack.c.bf16 %v547_v18, %v532_v17  ;;  %v810_v30 = vpack.c.bf16 %v577_v20, %v562_v19 }
  0x16   :  { %778 = vmatpush1.bf16.msra.mxu0 %v777_v10  ;;  %831 = vmatpush1.bf16.msra.mxu1 %v777_v10  ;;  %v79_v35 = vsel %vm78_vm5, %v730_v34, %v883_v0  ;;  %v125_v40 = vsel %vm78_vm5, %v733_v36, %v883_v0  ;;  %v102_v42 = vmax.f32 %v732_v39, %v883_v0 }
  0x17   :  { %779 = vmatprep.subr.bf16.mxu0 %v847_v3  ;;  %816 = vmatprep.subr.bf16.mxu1 %v847_v3 }
  0x1a   :  { %781 = vmatpush1.bf16.msra.mxu0 %v780_v21  ;;  %832 = vmatpush1.bf16.msra.mxu1 %v780_v21 }
  0x1b   :  { %782 = vmatprep.subr.bf16.mxu0 %v847_v3  ;;  %817 = vmatprep.subr.bf16.mxu1 %v847_v3 }
  0x1e   :  { %784 = vmatpush1.bf16.msra.mxu0 %v783_v22  ;;  %833 = vmatpush1.bf16.msra.mxu1 %v783_v22 }
  0x1f   :  { %785 = vmatprep.subr.bf16.mxu0 %v847_v3  ;;  %818 = vmatprep.subr.bf16.mxu1 %v847_v3 }
  0x22   :  { %787 = vmatpush1.bf16.msra.mxu0 %v786_v23  ;;  %834 = vmatpush1.bf16.msra.mxu1 %v786_v23 }
  0x23   :  { %788 = vmatprep.subr.bf16.mxu0 %v847_v3  ;;  %819 = vmatprep.subr.bf16.mxu1 %v847_v3 }
  0x26   :  { %790 = vmatpush1.bf16.msra.mxu0 %v789_v1  ;;  %835 = vmatpush1.bf16.msra.mxu1 %v789_v1 }
  0x27   :  { %791 = vmatprep.subr.bf16.mxu0 %v847_v3  ;;  %820 = vmatprep.subr.bf16.mxu1 %v847_v3 }
  0x2a   :  { %793 = vmatpush1.bf16.msra.mxu0 %v792_v24  ;;  %836 = vmatpush1.bf16.msra.mxu1 %v792_v24 }
  0x2b   :  { %794 = vmatprep.subr.bf16.mxu0 %v847_v3  ;;  %821 = vmatprep.subr.bf16.mxu1 %v847_v3 }
  0x2e   :  { %796 = vmatpush1.bf16.msra.mxu0 %v795_v25  ;;  %837 = vmatpush1.bf16.msra.mxu1 %v795_v25 }
  0x2f   :  { %797 = vmatprep.subr.bf16.mxu0 %v847_v3  ;;  %822 = vmatprep.subr.bf16.mxu1 %v847_v3 }
  0x32   :  { %799 = vmatpush1.bf16.msra.mxu0 %v798_v26  ;;  %838 = vmatpush1.bf16.msra.mxu1 %v798_v26 }
  0x33   :  { %800 = vmatprep.subr.bf16.mxu0 %v847_v3  ;;  %823 = vmatprep.subr.bf16.mxu1 %v847_v3 }
  0x36   :  { %802 = vmatpush1.bf16.msra.mxu0 %v801_v27  ;;  %839 = vmatpush1.bf16.msra.mxu1 %v801_v27 }
  0x37   :  { %803 = vmatprep.subr.bf16.mxu0 %v847_v3  ;;  %824 = vmatprep.subr.bf16.mxu1 %v847_v3 }
  0x3a   :  { %805 = vmatpush1.bf16.msra.mxu0 %v804_v28  ;;  %840 = vmatpush1.bf16.msra.mxu1 %v804_v28 }
  0x3b   :  { %806 = vmatprep.subr.bf16.mxu0 %v847_v3  ;;  %825 = vmatprep.subr.bf16.mxu1 %v847_v3 }
  0x3e   :  { %808 = vmatpush1.bf16.msra.mxu0 %v807_v29  ;;  %841 = vmatpush1.bf16.msra.mxu1 %v807_v29 }
  0x3f   :  { %809 = vmatprep.subr.bf16.mxu0 %v847_v3  ;;  %826 = vmatprep.subr.bf16.mxu1 %v847_v3  ;;  %v50_v3 = vld [vmem:[%s1153_s4] sm:$0xff] }
  0x40   :  { %v58_v38 = vmax.f32 %v50_v3, %v883_v0 }
  0x42   :  { %811 = vmatpush1.bf16.msra.mxu0 %v810_v30  ;;  %842 = vmatpush1.bf16.msra.mxu1 %v810_v30 }
  0x43   :  { %702 = vmatprep.subr.mxu0 %v849_v31  ;;  %827 = vmatprep.subr.mxu1 %v849_v31 }
  0x46   :  { %764 = vmatpush1.msk.msra.mxu0 %vm638_vm4, %v630_v32  ;;  %843 = vmatpush1.msk.msra.mxu1 %vm638_vm4, %v630_v32 }
  0x7d   :  { %v72_v37 = vpop.permute.xlu0 %71 }
  0x7e   :  { %v82_v5 = vmax.f32 %v79_v35, %v72_v37 }
  0x80   :  { %765 = vmatprep.mubr.msk.f32.mxu0 %vm631_vm6, %v82_v5 }
  0x81   :  { %v118_v41 = vpop.permute.xlu0 %117  ;;  %707 = vmatmul.mubr.f32.vlgmr.msra.gmra.mrb[0].mxu0 %v58_v38 }
  0x82   :  { %v128_v43 = vmax.f32 %v125_v40, %v118_v41 }
  0x84   :  { %766 = vmatprep.mubr.msk.f32.mxu1 %vm631_vm6, %v128_v43 }
  0x85   :  { %712 = vmatmul.mubr.f32.vlgmr.msra.gmra.mrb[0].mxu1 %v102_v42 }
 0x154   :  { %v708_v44 = vpop.f32.mrb[0].mxu0 }
 0x155   :  { %718 = vst.msk [vmem:[%s1154_s5] sm:$0xff] %vm717_vm7, %v708_v44  ;;  %v710_v45 = vpop.f32.mrb[1].mxu0 }
 0x158   :  { %v713_v46 = vpop.f32.mrb[0].mxu1 }
 0x159   :  { %719 = vst.msk [vmem:[%s1154_s5 + $0x8] sm:$0xff] %vm717_vm7, %v713_v46  ;;  %v715_v47 = vpop.f32.mrb[1].mxu1 }

</bundles_post_ra>
